<compile_context>
chip_gen: v7x
topology: tpu7x:2x2x1
jax: 0.10.0
libtpu: 0.0.40
codegen_flags: <defaults>
</compile_context>

<pallas_src>
import functools

import jax
import jax.numpy as jnp
from jax.experimental import pallas as pl
from jax.experimental.pallas import tpu as pltpu

NUM_BITS = 32                 # bit_list = [1, ..., 32]
_MiB = 1024 * 1024


# ---------------------------------------------------------------------------
# Generation-aware budgets
# ---------------------------------------------------------------------------
def _vmem_capacity_bytes():
    try:
        info = pltpu.get_tpu_info()
        cap = getattr(info, "vmem_capacity_bytes", None)
        if cap:
            return int(cap)
    except Exception:
        pass
    return 64 * _MiB          # conservative (v7x-sized) fallback


def _budgets():
    """Returns (vmem_limit_bytes, fast_path_cutoff_bytes, hw_tile_target_bytes)."""
    cap = _vmem_capacity_bytes()
    if cap >= 100 * _MiB:                     # v5e / v6e: 128 MiB physical VMEM
        return 96 * _MiB, 32 * _MiB, 6 * _MiB
    return 48 * _MiB, 14 * _MiB, 3 * _MiB     # v7x (64 MiB physical) or unknown


def _cdiv(a, b):
    return -(-a // b)


# ---------------------------------------------------------------------------
# Kernels
# ---------------------------------------------------------------------------
def _stats_kernel(x_ref, sum_ref, sq_ref, *, hw, t_hw, needs_mask):
    """Pass 1: per-(N, C) partial sum / sum-of-squares over HW tiles.

    x_ref            : (1, C, t_hw) tile of x viewed as (N, C, H*W)
    sum_ref / sq_ref : (1, C, 1) per-N partial outputs, accumulated across the
                       HW ("arbitrary") grid axis; the N axis is "parallel"
                       so both v7x TensorCores share pass-1 HBM traffic.
    """
    l = pl.program_id(1)
    x = x_ref[0].astype(jnp.float32)                       # (C, t_hw)
    if needs_mask:                                         # static: tail tile exists
        lane = jax.lax.broadcasted_iota(jnp.int32, x.shape, 1)
        x = jnp.where(l * t_hw + lane < hw, x, 0.0)

    ps = jnp.sum(x, axis=1, keepdims=True)                 # (C, 1) lane reduce
    pq = jnp.sum(x * x, axis=1, keepdims=True)             # (C, 1)

    @pl.when(l == 0)
    def _init():
        sum_ref[...] = ps[None]
        sq_ref[...] = pq[None]

    @pl.when(l > 0)
    def _acc():
        sum_ref[...] += ps[None]
        sq_ref[...] += pq[None]


def _normalize_kernel(scale_ref, shift_ref, x_ref, o_ref):
    """Pass 2: y = x * scale + shift (per-channel vectors broadcast over lanes)."""
    x = x_ref[...].astype(jnp.float32)                     # (1, C, t_hw)
    y = x * scale_ref[...][None] + shift_ref[...][None]
    o_ref[...] = y.astype(o_ref.dtype)


def _fused_kernel(gamma_ref, beta_ref, x_ref, o_ref, scale_ref, shift_ref,
                  *, eps, inv_count, t_out, n_tiles, c):
    """Fast path: x resident in VMEM (read from HBM once), tiled output stores.

    Grid step 0 accumulates per-channel stats strip-by-strip (no full-size f32
    temporary) and folds them into scale/shift scratch; every grid step then
    normalizes one output tile read back from the resident x block.
    """
    i = pl.program_id(0)

    @pl.when(i == 0)
    def _stats():
        def body(s, carry):
            acc, acc2 = carry
            start = s * t_out
            if t_out % 128 == 0:
                start = pl.multiple_of(start, 128)
            xs = x_ref[:, :, pl.ds(start, t_out)].astype(jnp.float32)  # (N,C,t)
            acc = acc + jnp.sum(jnp.sum(xs, axis=2, keepdims=True), axis=0)
            acc2 = acc2 + jnp.sum(jnp.sum(xs * xs, axis=2, keepdims=True), axis=0)
            return acc, acc2

        init = (jnp.zeros((c, 1), jnp.float32), jnp.zeros((c, 1), jnp.float32))
        s_tot, sq_tot = jax.lax.fori_loop(0, n_tiles, body, init)
        mean = s_tot * inv_count
        var = jnp.maximum(sq_tot * inv_count - mean * mean, 0.0)
        inv_std = jax.lax.rsqrt(var + eps)
        scale = gamma_ref[...].astype(jnp.float32) * inv_std
        scale_ref[...] = scale
        shift_ref[...] = beta_ref[...].astype(jnp.float32) - mean * scale

    start = i * t_out
    if t_out % 128 == 0:
        start = pl.multiple_of(start, 128)
    x = x_ref[:, :, pl.ds(start, t_out)].astype(jnp.float32)           # (N,C,t)
    o_ref[...] = (x * scale_ref[...][None] + shift_ref[...][None]).astype(o_ref.dtype)


# ---------------------------------------------------------------------------
# Tile selection
# ---------------------------------------------------------------------------
def _round_up(x, m):
    return ((x + m - 1) // m) * m


def _pick_hw_tile(hw, c, elem_bytes, target_bytes):
    """cdiv-friendly lane tile: multiple of 128 capped by target, else full hw."""
    if hw <= 128:
        return hw                                   # full extent (always legal)
    per_lane = max(1, c * elem_bytes)
    max_t = max(128, (target_bytes // per_lane) // 128 * 128)
    if max_t >= hw:
        return hw                                   # one full-extent lane block
    return int(max_t)                               # multiple of 128; tail masked


def _pick_fast_out_tile(hw, n, c, elem_bytes, target_bytes):
    """Output tile for the fused path; must divide hw exactly (no OOB reads
    from the resident VMEM block)."""
    if hw < 128 or hw % 128 != 0:
        return hw                                   # single full-extent block
    per_lane = max(1, n * c * elem_bytes)
    best, t = 128, 128
    while t <= hw:
        if hw % t == 0 and t * per_lane <= target_bytes:
            best = t
        t += 128
    return best


# ---------------------------------------------------------------------------
# Wrapper
# ---------------------------------------------------------------------------
def switch_bn2d(x_nchw, gammas, betas, curr_bitwidth, *, eps=1e-5,
                force_two_pass=False, hw_tile_target_bytes=None):
    """Forward of SwitchBN2d (quant_mode=True, affine=True).

    x_nchw        : (N, C, H, W) array
    gammas, betas : (NUM_BITS, C) per-bitwidth BN weight / bias banks
    curr_bitwidth : python int in [1, 32]  (selects which BN params to use)
    """
    assert 1 <= curr_bitwidth <= NUM_BITS, "bitwidth not in self.bits"
    N, C, H, W = x_nchw.shape
    HW = H * W
    inv_count = 1.0 / float(N * HW)

    # Parameter "switch" -- curr_bitwidth is a Python int, so slice here.
    gamma = gammas[curr_bitwidth - 1].reshape(C, 1).astype(jnp.float32)
    beta = betas[curr_bitwidth - 1].reshape(C, 1).astype(jnp.float32)

    # Free relayout: NCHW viewed as (N, C, H*W).  No HBM transpose traffic.
    x3 = x_nchw.reshape(N, C, HW)
    elem = x3.dtype.itemsize
    total_bytes = N * C * HW * elem

    vmem_limit, fast_cutoff, hw_target = _budgets()
    if hw_tile_target_bytes is not None:
        hw_target = int(hw_tile_target_bytes)

    # ------------------- fused single-HBM-read fast path --------------------
    if not force_two_pass and total_bytes <= fast_cutoff:
        t_out = _pick_fast_out_tile(HW, N, C, elem, hw_target)
        n_tiles = HW // t_out                       # exact by construction
        out_tile_bytes = N * C * t_out * elem
        # Budget: resident x (assume 2x buffered) + 2x output tile + params.
        fast_vmem = 2 * total_bytes + 2 * out_tile_bytes + 16 * C * 4
        if fast_vmem <= vmem_limit - 4 * _MiB:
            y3 = pl.pallas_call(
                functools.partial(_fused_kernel, eps=eps, inv_count=inv_count,
                                  t_out=t_out, n_tiles=n_tiles, c=C),
                out_shape=jax.ShapeDtypeStruct((N, C, HW), x3.dtype),
                grid_spec=pltpu.PrefetchScalarGridSpec(
                    num_scalar_prefetch=0,
                    grid=(n_tiles,),
                    in_specs=[
                        pl.BlockSpec((C, 1), lambda i: (0, 0)),
                        pl.BlockSpec((C, 1), lambda i: (0, 0)),
                        pl.BlockSpec((N, C, HW), lambda i: (0, 0, 0)),  # resident
                    ],
                    out_specs=pl.BlockSpec((N, C, t_out), lambda i: (0, 0, i)),
                    scratch_shapes=[pltpu.VMEM((C, 1), jnp.float32),
                                    pltpu.VMEM((C, 1), jnp.float32)],
                ),
                compiler_params=pltpu.CompilerParams(
                    dimension_semantics=("arbitrary",),
                    vmem_limit_bytes=vmem_limit),
            )(gamma, beta, x3)
            return y3.reshape(N, C, H, W)

    # ---------------- tiled two-pass path (large activations) ---------------
    t_hw = _pick_hw_tile(HW, C, elem, hw_target)
    L = _cdiv(HW, t_hw)
    needs_mask = (HW % t_hw) != 0

    x_spec = pl.BlockSpec((1, C, t_hw), lambda n, l: (n, 0, l))
    vec_spec = pl.BlockSpec((C, 1), lambda n, l: (0, 0))
    nvec_spec = pl.BlockSpec((1, C, 1), lambda n, l: (n, 0, 0))

    # Pass 1: per-N partial stats (N axis parallel -> both TCs on v7x).
    part_sum, part_sq = pl.pallas_call(
        functools.partial(_stats_kernel, hw=HW, t_hw=t_hw, needs_mask=needs_mask),
        out_shape=(jax.ShapeDtypeStruct((N, C, 1), jnp.float32),
                   jax.ShapeDtypeStruct((N, C, 1), jnp.float32)),
        grid_spec=pltpu.PrefetchScalarGridSpec(
            num_scalar_prefetch=0,
            grid=(N, L),
            in_specs=[x_spec],
            out_specs=(nvec_spec, nvec_spec),
        ),
        compiler_params=pltpu.CompilerParams(
            dimension_semantics=("parallel", "arbitrary"),
            vmem_limit_bytes=vmem_limit),
    )(x3)

    # Tiny O(N*C) finalize in plain JAX: fold stats into scale/shift.
    s = jnp.sum(part_sum, axis=0)                   # (C, 1)
    s2 = jnp.sum(part_sq, axis=0)                   # (C, 1)
    mean = s * inv_count
    var = jnp.maximum(s2 * inv_count - mean * mean, 0.0)
    inv_std = jax.lax.rsqrt(var + eps)
    scale = gamma * inv_std
    shift = beta - mean * scale

    # Pass 2: y = x*scale + shift  (fully parallel grid).
    y3 = pl.pallas_call(
        _normalize_kernel,
        out_shape=jax.ShapeDtypeStruct((N, C, HW), x3.dtype),
        grid_spec=pltpu.PrefetchScalarGridSpec(
            num_scalar_prefetch=0,
            grid=(N, L),
            in_specs=[vec_spec, vec_spec, x_spec],
            out_specs=x_spec,
        ),
        compiler_params=pltpu.CompilerParams(
            dimension_semantics=("parallel", "parallel"),
            vmem_limit_bytes=vmem_limit),
    )(scale, shift, x3)

    return y3.reshape(N, C, H, W)


# ---------------------------------------------------------------------------
# Reference & demo
# ---------------------------------------------------------------------------
def _reference(x_nchw, gammas, betas, curr_bitwidth, eps=1e-5):
    """Pure-JAX reference of BatchNorm2d (train mode) with selected params."""
    g = gammas[curr_bitwidth - 1]
    b = betas[curr_bitwidth - 1]
    mean = jnp.mean(x_nchw, axis=(0, 2, 3), keepdims=True)
    var = jnp.mean((x_nchw - mean) ** 2, axis=(0, 2, 3), keepdims=True)
    xhat = (x_nchw - mean) / jnp.sqrt(var + eps)
    return xhat * g[None, :, None, None] + b[None, :, None, None]


if __name__ == "__main__":
    key = jax.random.PRNGKey(0)
    k_x, k_g, k_b, k_x2, k_x3 = jax.random.split(key, 5)

    # Small demo shape consistent with the module (NCHW).
    N, C, H, W = 2, 4, 16, 16
    x = jax.random.normal(k_x, (N, C, H, W), dtype=jnp.float32)

    # Per-bitwidth BN affine parameter bank (perturbed from PyTorch's default
    # gamma=1, beta=0 so the bitwidth switch is observable).
    gammas = 1.0 + 0.1 * jax.random.normal(k_g, (NUM_BITS, C), jnp.float32)
    betas = 0.1 * jax.random.normal(k_b, (NUM_BITS, C), jnp.float32)

    bw = 8  # set_bitwidth(8)
    y_ref = _reference(x, gammas, betas, bw)

    # 1) Fused fast path with a forced-small output tile (128 lanes -> 2 tiles).
    y1 = jax.block_until_ready(
        switch_bn2d(x, gammas, betas, bw, hw_tile_target_bytes=4096))
    assert y1.shape == (N, C, H, W)
    assert jnp.allclose(y1, y_ref, atol=1e-4, rtol=1e-4), "fused (tiled) mismatch"

    # 2) Fused fast path with default (generation-aware) tiling.
    y2 = jax.block_until_ready(switch_bn2d(x, gammas, betas, bw))
    assert jnp.allclose(y2, y_ref, atol=1e-4, rtol=1e-4), "fused (default) mismatch"

    # 3) Forced two-pass path, exact 128-lane tiling (HW=512 -> 4 tiles, no mask).
    N2, C2, H2, W2 = 2, 4, 16, 32
    x2 = jax.random.normal(k_x2, (N2, C2, H2, W2), dtype=jnp.float32)
    y3 = jax.block_until_ready(
        switch_bn2d(x2, gammas, betas, bw, force_two_pass=True,
                    hw_tile_target_bytes=2048))
    assert jnp.allclose(y3, _reference(x2, gammas, betas, bw),
                        atol=1e-4, rtol=1e-4), "two-pass mismatch"

    # 4) Non-multiple-of-128 spatial size (HW=150): fused full-extent block and
    #    forced two-pass with a masked tail tile (t_hw=128 -> L=2).
    N3, C3, H3, W3 = 2, 4, 10, 15
    x3 = jax.random.normal(k_x3, (N3, C3, H3, W3), dtype=jnp.float32)
    y4_ref = _reference(x3, gammas, betas, bw)
    y4a = jax.block_until_ready(switch_bn2d(x3, gammas, betas, bw))
    assert jnp.allclose(y4a, y4_ref, atol=1e-4, rtol=1e-4), "fused odd-HW mismatch"
    y4b = jax.block_until_ready(
        switch_bn2d(x3, gammas, betas, bw, force_two_pass=True,
                    hw_tile_target_bytes=2048))
    assert jnp.allclose(y4b, y4_ref, atol=1e-4, rtol=1e-4), "masked-tail mismatch"

    # 5) bf16 activations through the fused path (f32 internal math).
    xb = x.astype(jnp.bfloat16)
    y5 = jax.block_until_ready(switch_bn2d(xb, gammas, betas, bw))
    y5_ref = _reference(xb.astype(jnp.float32), gammas, betas, bw)
    assert y5.dtype == jnp.bfloat16
    assert jnp.allclose(y5.astype(jnp.float32), y5_ref,
                        atol=3e-2, rtol=3e-2), "bf16 mismatch"

    print("KERNEL_OK")
</pallas_src>

<mosaic_0001>
module attributes {stable_mosaic.version = 11 : i64} {
  func.func @_fused_kernel(%arg0: i32, %arg1: memref<4x1xf32, #tpu.memory_space<vmem>>, %arg2: memref<4x1xf32, #tpu.memory_space<vmem>>, %arg3: memref<2x4x256xf32, #tpu.memory_space<vmem>>, %arg4: memref<2x4x128xf32, #tpu.memory_space<vmem>>, %arg5: memref<4x1xf32, #tpu.memory_space<vmem>>, %arg6: memref<4x1xf32, #tpu.memory_space<vmem>>) attributes {dimension_semantics = [#tpu.dimension_semantics<arbitrary>], iteration_bounds = array<i64: 2>, scalar_prefetch = 0 : i64, scratch_operands = 2 : i64, tpu.core_type = #tpu.core_type<tc>, window_params = [{pipeline_mode = #tpu.pipeline_mode<synchronous>, transform_indices = @transform_0, window_bounds = array<i64: 4, 1>}, {pipeline_mode = #tpu.pipeline_mode<synchronous>, transform_indices = @transform_1, window_bounds = array<i64: 4, 1>}, {pipeline_mode = #tpu.pipeline_mode<synchronous>, transform_indices = @transform_2, window_bounds = array<i64: 2, 4, 256>}, {transform_indices = @transform_3, window_bounds = array<i64: 2, 4, 128>}]} {
    %c0_i32 = arith.constant 0 : i32
    %0 = arith.cmpi eq, %arg0, %c0_i32 : i32
    %1 = arith.extui %0 : i1 to i32
    %c0_i32_0 = arith.constant 0 : i32
    %2 = arith.cmpi ne, %1, %c0_i32_0 : i32
    scf.if %2 {
      %cst = arith.constant 0.000000e+00 : f32
      %16 = vector.broadcast %cst : f32 to vector<4x1xf32>
      %cst_9 = arith.constant 0.000000e+00 : f32
      %17 = vector.broadcast %cst_9 : f32 to vector<4x1xf32>
      %c0_i32_10 = arith.constant 0 : i32
      %c2_i32 = arith.constant 2 : i32
      %18 = arith.addi %c0_i32_10, %c2_i32 : i32
      %c1_i32 = arith.constant 1 : i32
      %19:2 = scf.for %arg7 = %c0_i32_10 to %18 step %c1_i32 iter_args(%arg8 = %16, %arg9 = %17) -> (vector<4x1xf32>, vector<4x1xf32>)  : i32 {
        %c128_i32_24 = arith.constant 128 : i32
        %38 = arith.muli %arg7, %c128_i32_24 : i32
        %39 = tpu.assume_multiple %38, 128 : i32
        %c0_25 = arith.constant 0 : index
        %c0_26 = arith.constant 0 : index
        %40 = arith.index_cast %39 : i32 to index
        %41 = vector.load %arg3[%c0_25, %c0_26, %40] : memref<2x4x256xf32, #tpu.memory_space<vmem>>, vector<2x4x128xf32>
        %cst_27 = arith.constant dense<0.000000e+00> : vector<2x4xf32>
        %42 = vector.multi_reduction <add>, %41, %cst_27 [2] : vector<2x4x128xf32> to vector<2x4xf32>
        %43 = vector.shape_cast %42 : vector<2x4xf32> to vector<2x4x1xf32>
        %cst_28 = arith.constant dense<0.000000e+00> : vector<4x1xf32>
        %44 = vector.multi_reduction <add>, %43, %cst_28 [0] : vector<2x4x1xf32> to vector<4x1xf32>
        %45 = arith.addf %arg8, %44 : vector<4x1xf32>
        %46 = arith.mulf %41, %41 : vector<2x4x128xf32>
        %cst_29 = arith.constant dense<0.000000e+00> : vector<2x4xf32>
        %47 = vector.multi_reduction <add>, %46, %cst_29 [2] : vector<2x4x128xf32> to vector<2x4xf32>
        %48 = vector.shape_cast %47 : vector<2x4xf32> to vector<2x4x1xf32>
        %cst_30 = arith.constant dense<0.000000e+00> : vector<4x1xf32>
        %49 = vector.multi_reduction <add>, %48, %cst_30 [0] : vector<2x4x1xf32> to vector<4x1xf32>
        %50 = arith.addf %arg9, %49 : vector<4x1xf32>
        scf.yield %45, %50 : vector<4x1xf32>, vector<4x1xf32>
      }
      %c2_i32_11 = arith.constant 2 : i32
      %cst_12 = arith.constant 0.001953125 : f32
      %20 = vector.broadcast %cst_12 : f32 to vector<4x1xf32>
      %21 = arith.mulf %19#0, %20 : vector<4x1xf32>
      %cst_13 = arith.constant 0.001953125 : f32
      %22 = vector.broadcast %cst_13 : f32 to vector<4x1xf32>
      %23 = arith.mulf %19#1, %22 : vector<4x1xf32>
      %24 = arith.mulf %21, %21 : vector<4x1xf32>
      %25 = arith.subf %23, %24 : vector<4x1xf32>
      %cst_14 = arith.constant 0.000000e+00 : f32
      %26 = vector.broadcast %cst_14 : f32 to vector<4x1xf32>
      %27 = arith.maximumf %25, %26 : vector<4x1xf32>
      %cst_15 = arith.constant 9.99999974E-6 : f32
      %28 = vector.broadcast %cst_15 : f32 to vector<4x1xf32>
      %29 = arith.addf %27, %28 : vector<4x1xf32>
      %30 = math.rsqrt %29 : vector<4x1xf32>
      %c0_16 = arith.constant 0 : index
      %c0_17 = arith.constant 0 : index
      %31 = vector.load %arg1[%c0_16, %c0_17] : memref<4x1xf32, #tpu.memory_space<vmem>>, vector<4x1xf32>
      %32 = arith.mulf %31, %30 : vector<4x1xf32>
      %c0_18 = arith.constant 0 : index
      %c0_19 = arith.constant 0 : index
      %33 = vector.load %arg5[%c0_18, %c0_19] : memref<4x1xf32, #tpu.memory_space<vmem>>, vector<4x1xf32>
      tpu.vector_store %arg5[%c0_18, %c0_19], %32 {strides = array<i32>} : memref<4x1xf32, #tpu.memory_space<vmem>>, vector<4x1xf32>,
      %c0_20 = arith.constant 0 : index
      %c0_21 = arith.constant 0 : index
      %34 = vector.load %arg2[%c0_20, %c0_21] : memref<4x1xf32, #tpu.memory_space<vmem>>, vector<4x1xf32>
      %35 = arith.mulf %21, %32 : vector<4x1xf32>
      %36 = arith.subf %34, %35 : vector<4x1xf32>
      %c0_22 = arith.constant 0 : index
      %c0_23 = arith.constant 0 : index
      %37 = vector.load %arg6[%c0_22, %c0_23] : memref<4x1xf32, #tpu.memory_space<vmem>>, vector<4x1xf32>
      tpu.vector_store %arg6[%c0_22, %c0_23], %36 {strides = array<i32>} : memref<4x1xf32, #tpu.memory_space<vmem>>, vector<4x1xf32>,
    } else {
    }
    %c128_i32 = arith.constant 128 : i32
    %3 = arith.muli %arg0, %c128_i32 : i32
    %4 = tpu.assume_multiple %3, 128 : i32
    %c0 = arith.constant 0 : index
    %c0_1 = arith.constant 0 : index
    %5 = arith.index_cast %4 : i32 to index
    %6 = vector.load %arg3[%c0, %c0_1, %5] : memref<2x4x256xf32, #tpu.memory_space<vmem>>, vector<2x4x128xf32>
    %c0_2 = arith.constant 0 : index
    %c0_3 = arith.constant 0 : index
    %7 = vector.load %arg5[%c0_2, %c0_3] : memref<4x1xf32, #tpu.memory_space<vmem>>, vector<4x1xf32>
    %8 = vector.shape_cast %7 : vector<4x1xf32> to vector<1x4x1xf32>
    %9 = vector.broadcast %8 : vector<1x4x1xf32> to vector<2x4x128xf32>
    %10 = arith.mulf %6, %9 : vector<2x4x128xf32>
    %c0_4 = arith.constant 0 : index
    %c0_5 = arith.constant 0 : index
    %11 = vector.load %arg6[%c0_4, %c0_5] : memref<4x1xf32, #tpu.memory_space<vmem>>, vector<4x1xf32>
    %12 = vector.shape_cast %11 : vector<4x1xf32> to vector<1x4x1xf32>
    %13 = vector.broadcast %12 : vector<1x4x1xf32> to vector<2x4x128xf32>
    %14 = arith.addf %10, %13 : vector<2x4x128xf32>
    %c0_6 = arith.constant 0 : index
    %c0_7 = arith.constant 0 : index
    %c0_8 = arith.constant 0 : index
    %15 = vector.load %arg4[%c0_6, %c0_7, %c0_8] : memref<2x4x128xf32, #tpu.memory_space<vmem>>, vector<2x4x128xf32>
    tpu.vector_store %arg4[%c0_6, %c0_7, %c0_8], %14 {strides = array<i32>} : memref<2x4x128xf32, #tpu.memory_space<vmem>>, vector<2x4x128xf32>,
    return
  }
  func.func @transform_0(%arg0: i32) -> (i32, i32) {
    %c0_i32 = arith.constant 0 : i32
    %c0_i32_0 = arith.constant 0 : i32
    %c0_i32_1 = arith.constant 0 : i32
    return %c0_i32, %c0_i32_0 : i32, i32
  }
  func.func @transform_1(%arg0: i32) -> (i32, i32) {
    %c0_i32 = arith.constant 0 : i32
    %c0_i32_0 = arith.constant 0 : i32
    %c0_i32_1 = arith.constant 0 : i32
    return %c0_i32, %c0_i32_0 : i32, i32
  }
  func.func @transform_2(%arg0: i32) -> (i32, i32, i32) {
    %c0_i32 = arith.constant 0 : i32
    %c0_i32_0 = arith.constant 0 : i32
    %c0_i32_1 = arith.constant 0 : i32
    %c0_i32_2 = arith.constant 0 : i32
    return %c0_i32, %c0_i32_0, %c0_i32_1 : i32, i32, i32
  }
  func.func @transform_3(%arg0: i32) -> (i32, i32, i32) {
    %c0_i32 = arith.constant 0 : i32
    %c0_i32_0 = arith.constant 0 : i32
    %c0_i32_1 = arith.constant 0 : i32
    return %c0_i32, %c0_i32_0, %arg0 : i32, i32, i32
  }
}

</mosaic_0001>

<bundles_post_ra>
// kernel: tpu_custom_call.1
= control target key start
LH: loop header
LB: loop body
LE: loop exit
PB: predicated region body
PF: predicated region fallthrough
CT: control target
= control target key end

     0   :  { %8 = vsyncpa [#allocation5], 0  ;;  %s643_s0 = inlined_call_operand.vmem [shape: f32[4,1], index: 0, kind: input, shape index: {}]   ;;  %s644_s1 = inlined_call_operand.vmem [shape: f32[4,1], index: 1, kind: input, shape index: {}]   ;;  %s645_s2 = inlined_call_operand.vmem [shape: f32[2,4,256], index: 2, kind: input, shape index: {}]   ;;  %s646_s3 = inlined_call_operand.hbm [shape: f32[2,4,256], index: 3, kind: output, shape index: {}]  }
   0x1   :  { %10 = vsyncpa [#allocation5 + $0x1], 0  ;;  %s505_s12 = smov 0   ;;  %s507_s13 = smov 0  }
   0x2   :  { %s509_s14 = smov 0   ;;  %s511_s15 = smov 0  }
   0x3 LB: > { %s526_s16 = sadd.s32 4294967295, %s466_s15   ;;  %s309_s17 = sadd.s32 4294967294, %s466_s15   ;;  %s466_s15 = sphi %s511_s15, %s652_s15   ;;  %s462_s14 = sphi %s509_s14, %s651_s14   ;;  %s458_s13 = sphi %s507_s13, %s650_s13   ;;  %s454_s12 = sphi %s505_s12, %s649_s12  }
   0x4   : > { %s530_s18 = sadd.s32 1, %s466_s15   ;;  %s86_s19 = sadd.s32 1, %s462_s14 }
   0x5   : > { %s83_s20 = ssub.s32 %s466_s15, %s530_s18  ;;  %p96_p0 = scmp.ne.s32.totalorder %s462_s14, %s458_s13 }
   0x6   : > { %p84_p1 = scmp.eq.s32.totalorder %s83_s20, 0  ;;  %p97_p2 = scmp.eq.s32.totalorder %s526_s16, 1 }
   0x7   : > { %p102_p3 = scmp.ne.s32.totalorder %s458_s13, %s454_s12  ;;  %p103_p4 = scmp.eq.s32.totalorder %s309_s17, 1 }
   0x8   : > { %s541_s21 = scalar_select %p84_p1, %s462_s14, %s86_s19  }
   0x9   : > { %p543_p5 = por %p97_p2, %p96_p0  ;;  %p547_p6 = por %p103_p4, %p102_p3 }
   0xa   : > { %p311_p7 = scmp.ge.s32.totalorder %s466_s15, 1  ;;  %p130_p8 = scmp.lt.s32.totalorder %s466_s15, 3 }
   0xc   : > { %p131_p9 = pnand %p311_p7, %p130_p8 }
   0xd   : > { %s146_s24 = sand.u32 (!%p131_p9), 1, %s458_s13   ;;  %p313_p10 = scmp.ne.s32.totalorder (!%p131_p9), %s526_s16, 0 }
   0xe   : > { %134 = sbr.rel (%p131_p9) target bundleno = 366 (0x16e), region = 32  ;;  %s312_s25 = sshll.u32 (!%p131_p9), %s146_s24, 3 }
   0xf   : > { %s556_s26 = scalar_lea.vmem (!%p131_p9), [#allocation4], %s312_s25 }
  0x15   : > { %152 = sbr.rel (%p313_p10) target bundleno = 213 (0xd5), region = 36  ;;  %v468_v0 = vmov (!%p313_p10), 0.0   ;;  %v472_v1 = vmov (!%p313_p10), 0.0   ;;  %s559_s27 = smov (!%p313_p10), 0  }
  0x1c LB: >> { %s314_s28 = sshll.u32 %s478_s27, 7  ;;  %vm168_vm0 = vcmask 1043456   ;;  %s158_s27 = sadd.s32 1, %s478_s27   ;;  %s478_s27 = sphi %s559_s27, %s158_s27   ;;  %v474_v1 = vphi %v472_v1, %v473_v1   ;;  %v470_v0 = vphi %v468_v0, %v469_v0  }
  0x1d   : >> { %s162_s29 = sshra.s32 %s314_s28, 7  ;;  %p155_p11 = scmp.ge.s32.totalorder %s158_s27, 2  }
  0x1e   : >> { %s315_s30 = sshll.u32 %s162_s29, 2  ;;  %v198_v28 = vld [vmem:[%s643_s0] sm:$0xf] (%p155_p11)  ;;  %vm200_vm1 = vcmask (%p155_p11), 3072  }
  0x1f   : >> { %s165_s6 = scalar_lea.vmem %s645_s2, %s315_s30  ;;  %v202_v31 = vld [vmem:[%s644_s1] sm:$0xf] (%p155_p11) }
  0x20   : >> { %v166_v2 = vld [vmem:[%s165_s6] sm:$0xf]  ;;  %v167_v3 = vld [vmem:[%s165_s6 + $0x8] sm:$0xf] }
  0x21   : >> { %v169_v4 = vsel %vm168_vm0, %v166_v2, 0.0  ;;  %v179_v5 = vmul.f32 %v166_v2, %v166_v2  ;;  %v180_v6 = vmul.f32 %v167_v3, %v167_v3  ;;  %v172_v8 = vsel %vm168_vm0, %v167_v3, 0.0 }
  0x22   : >> { %170 = vadd.xlane.f32.xlu0 %v169_v4 }
  0x23   : >> { %v181_v7 = vsel %vm168_vm0, %v179_v5, 0.0  ;;  %v184_v9 = vsel %vm168_vm0, %v180_v6, 0.0 }
  0x24   : >> { %182 = vadd.xlane.f32.xlu1 %v181_v7 }
  0x26   : >> { %173 = vadd.xlane.f32.xlu0 %v172_v8 }
  0x28   : >> { %185 = vadd.xlane.f32.xlu1 %v184_v9 }
  0xaf   : >> { %v171_v10 = vpop.xlane.xlu0 %170 }
  0xb0   : >> { %v175_v13 = vsel %vm168_vm0, %v171_v10, 0.0 }
  0xb1   : >> { %v183_v11 = vpop.xlane.xlu1 %182 }
  0xb2   : >> { %v187_v17 = vsel %vm168_vm0, %v183_v11, 0.0 }
  0xb3   : >> { %v174_v12 = vpop.xlane.xlu0 %173 }
  0xb4   : >> { %v176_v14 = vsel %vm168_vm0, %v174_v12, 0.0 }
  0xb5   : >> { %v177_v15 = vadd.f32 %v176_v14, %v175_v13  ;;  %v186_v16 = vpop.xlane.xlu1 %185  ;;  %157 = sbr.rel (!%p155_p11) target bundleno = 28 (0x1c), region = 77 }
  0xb6   : >> { %v188_v18 = vsel %vm168_vm0, %v186_v16, 0.0 }
  0xb7   : >> { %v178_v19 = vadd.f32 %v474_v1, %v177_v15   ;;  %v189_v20 = vadd.f32 %v188_v18, %v187_v17 }
  0xb9   : >> { %v190_v21 = vadd.f32 %v470_v0, %v189_v20   ;;  %v473_v1 = vmov %v178_v19   ;;  %v191_v22 = vmul.f32 (%p155_p11), 0.001953125, %v178_v19 }
  0xbb   : >> { %v469_v0 = vmov %v190_v21   ;;  %v192_v23 = vmul.f32 (%p155_p11), 0.001953125, %v190_v21  ;;  %v193_v24 = vmul.f32 (%p155_p11), %v191_v22, %v191_v22 }
  0xbd   : > { %v194_v25 = vsub.f32 %v192_v23, %v193_v24 }
  0xbf   : > { %v195_v26 = vmax.f32 %v194_v25, 0.0 }
  0xc1   : > { %v196_v27 = vadd.f32 1e-05, %v195_v26 }
  0xc3   : > { %389 = vrsqrt.f32 %v196_v27 }
  0xcd   : > { %v390_v29 = vpop.eup %389 }
  0xce   : > { %v199_v30 = vmul.f32 %v390_v29, %v198_v28 }
  0xd0   : > { %201 = vst.msk [vmem:[#allocation2] sm:$0xf] %vm200_vm1, %v199_v30  ;;  %v203_v32 = vmul.f32 %v199_v30, %v191_v22 }
  0xd2   : > { %v204_v33 = vsub.f32 %v202_v31, %v203_v32 }
  0xd4   : > { %205 = vst.msk [vmem:[#allocation3] sm:$0xf] %vm200_vm1, %v204_v33 }
  0xd5 PF: > { %v480_v35 = vmov 0   ;;  %s316_s11 = sshll.u32 %s526_s16, 7  ;;  %s319_s28 = sshll.u32 %s526_s16, 6 }
  0xd6   : > { %391 = vset.pattern.permute.xlu0 %v480_v35  ;;  %s207_s17 = sshra.s32 %s316_s11, 7  ;;  %s244_s29 = sshll.u32 %s556_s26, 4  ;;  %s596_s29 = int_to_ptr.vmem [resolvable:$true] %s244_s29 }
  0xd7   : > { %v213_v34 = vld [vmem:[#allocation2] sm:$0xf]  ;;  %s317_s19 = sshll.u32 %s207_s17, 2  ;;  %s594_s5 = scalar_lea.hbm %s646_s3, %s319_s28 }
  0xd8   : > { %216 = vperm.xlu0 %391, %v213_v34   ;;  %s210_s27 = scalar_lea.vmem %s645_s2, %s317_s19  ;;  %s602_s16 = scalar_lea.sflag [#allocation5], %s146_s24 }
  0xd9   : > { %v211_v38 = vld [vmem:[%s210_s27] sm:$0xf]  ;;  %v212_v39 = vld [vmem:[%s210_s27 + $0x8] sm:$0xf]  ;;  %s392_s6 = scalar_lea.vmem %s596_s29, 128  ;;  %s481_s7 = smov [#allocation4]  }
  0xda   : > { %p393_p12 = scmp.ne.s32.totalorder %s596_s29, %s392_s6  ;;  %s396_s8 = sshll.u32 %s481_s7, 4  ;;  %s397_s8 = int_to_ptr.vmem [resolvable:$false] %s396_s8 }
  0xdb   : > { %v221_v36 = vld [vmem:[#allocation3] sm:$0xf]  ;;  %s398_s9 = scalar_lea.vmem %s397_s8, 256  ;;  %p399_p1 = scmp.lt.s32.totalorder %s596_s29, %s397_s8 }
  0xdc   : > { %224 = vperm.xlu0 %391, %v221_v36   ;;  %p394_p13 = pnand %p393_p12, %p543_p5  ;;  %p400_p2 = scmp.lt.s32.totalorder %s398_s9, %s392_s6 }
  0xde   : > { %p395_p0 = pneg %p394_p13  ;;  %p401_p3 = por %p400_p2, %p399_p1 }
  0xe0   : > { %p402_p4 = pnand %p401_p3, %p395_p0 }
 0x157   : > { %v217_v37 = vpop.permute.xlu0 %216 }
 0x158   : > { %v219_v40 = vmul.f32 %v217_v37, %v211_v38  ;;  %v220_v41 = vmul.f32 %v217_v37, %v212_v39 }
 0x15b   : > { %v225_v42 = vpop.permute.xlu0 %224 }
 0x15c   : > { %v227_v43 = vadd.f32 %v225_v42, %v219_v40  ;;  %v228_v44 = vadd.f32 %v225_v42, %v220_v41 }
 0x15e   : > { %229 = vst [vmem:[%s556_s26] sm:$0xf] %v227_v43  ;;  %230 = vst [vmem:[%s556_s26 + $0x4] sm:$0xf] %v228_v44 }
 0x15f   : > { %405 = shalt.err (!%p402_p4)
}
 0x160   : > { %s406_s24 = scalar_lea.hbm %s594_s5, 128  ;;  %s410_s11 = scalar_lea.hbm %s646_s3, 256 }
 0x161   : > { %p407_p7 = scmp.ne.s32.totalorder %s594_s5, %s406_s24  ;;  %p411_p10 = scmp.lt.u32.totalorder %s594_s5, %s646_s3 }
 0x162   : > { %p412_p11 = scmp.lt.u32.totalorder %s410_s11, %s406_s24  ;;  %p414_p13 = scmp.lt.u32.totalorder %s406_s24, %s594_s5 }
 0x163   : > { %p408_p8 = pnand %p407_p7, %p543_p5 }
 0x164   : > { %p413_p12 = por %p412_p11, %p411_p10 }
 0x165   : > { %p409_p9 = pneg %p408_p8 }
 0x166   : > { %p415_p0 = por %p414_p13, %p413_p12 }
 0x168   : > { %p416_p1 = pnand %p415_p0, %p409_p9 }
 0x16a   : > { %419 = shalt.err (!%p416_p1)
}
 0x16b   : > { %s482_s20 = smov 64   ;;  %s483_s25 = smov 128  }
 0x16c   : > { %s484_s27 = smov 4  }
 0x16d   : > { %322 = dma.vmem_to_hbm [thread:$0]  (%p543_p5), %s596_s29, 128, %s594_s5, %s602_s16, %s482_s20, %s483_s25, %s484_s27  }
 0x16e PF: > { %p328_p2 = scmp.ge.s32.totalorder %s466_s15, 2  ;;  %s259_s28 = sand.u32 1, %s454_s12  }
 0x16f   : > { %s260_s30 = scalar_lea.sflag [#allocation5], %s259_s28 }
 0x170   : > { %p325_p3 = pnand %p328_p2, %p547_p6 }
 0x172   : > { %449 = dma.done.wait (!%p325_p3), %s260_s30, 128  }
 0x173   : > { %451 = vsyncadd (!%p325_p3), %s260_s30, 4294967168  ;;  %p13_p4 = scmp.ge.s32.totalorder %s530_s18, 4   ;;  %s649_s12 = smov %s458_s13 }
 0x174   : > { %s650_s13 = smov %s462_s14  ;;  %s651_s14 = smov %s541_s21 }
 0x175   : > { %s652_s15 = smov %s530_s18  ;;  %15 = sbr.rel (!%p13_p4) target bundleno = 3 (0x3), region = 88 }
 0x17c   :  { %265 = vsyncpa [#allocation5], 1 }
 0x17d   :  { %267 = vsyncpa [#allocation5 + $0x1], 1 }

</bundles_post_ra>
